<compile_context>
chip_gen: v7x
topology: tpu7x:2x2x1
jax: 0.10.0
libtpu: 0.0.40
codegen_flags: <defaults>
</compile_context>

<pallas_src>
import functools

import jax
import jax.numpy as jnp
from jax.experimental import pallas as pl
from jax.experimental.pallas import tpu as pltpu


def _round_up(n, m):
    return ((n + m - 1) // m) * m


def _prnn_kernel(gate_ref, sa_ref,        # SMEM (1,1): sig(dt), sig(dt)*a
                 x_ref,                   # VMEM (T*B, n_in), time-major rows (t*B + b)
                 we_ref, be_ref,          # encoder   (n_in, H), (1, H)   [H lane-padded]
                 wr_ref, br_ref,          # recurrent (H, H),    (1, H)
                 wd_ref, bd_ref,          # decoder   (H, O),    (1, O)   [O lane-padded]
                 y_ref,                   # VMEM (B, O) output
                 enc_ref,                 # VMEM scratch (T*B, H): precomputed encoder
                 *, seq_len, batch, unroll):
    B = batch
    H = wr_ref.shape[0]

    # One-shot encoder for every timestep (no sequential dependency). Fold both
    # biases in here so the recurrent loop body stays lean.
    enc_ref[...] = (jnp.dot(x_ref[...], we_ref[...],
                            preferred_element_type=jnp.float32)
                    + be_ref[...] + br_ref[...])

    # Hoist the scalar-gate broadcasts out of the loop (JAX does not CSE these).
    one_minus_s = jnp.broadcast_to(1.0 - gate_ref[0, 0], (B, H))
    s_times_a = jnp.broadcast_to(sa_ref[0, 0], (B, H))

    def step(t, h):
        row = pl.multiple_of(t * B, B)
        e_t = enc_ref[pl.ds(row, B), :]                          # (B, H)
        pre = e_t + jnp.dot(h, wr_ref[...],
                            preferred_element_type=jnp.float32)  # (B,H)@(H,H) MXU
        return one_minus_s * h + s_times_a * jnp.tanh(pre)

    h0 = jnp.zeros((B, H), jnp.float32)
    h = jax.lax.fori_loop(0, seq_len, step, h0, unroll=unroll)

    y_ref[...] = (jnp.dot(h, wd_ref[...], preferred_element_type=jnp.float32)
                  + bd_ref[...])


def _pad2(w, rows, cols):
    w = w.astype(jnp.float32)
    r, c = w.shape
    return jnp.pad(w, ((0, rows - r), (0, cols - c)))


@jax.jit
def prnn_forward(x, params):
    """x: (batch, seq, n_inputs) float32.  Returns y: (1, batch, n_output)."""
    B, T, n_in = x.shape
    n_hid = params["w_enc"].shape[1]
    n_out = params["w_dec"].shape[1]
    H = _round_up(n_hid, 128)      # lane-dense hidden dim
    O = _round_up(n_out, 128)      # lane-dense output dim (sliced back in wrapper)

    # Time-major flatten of x (rows are t*B + b) so the kernel's per-step slice of
    # the precomputed encoder is a contiguous, sublane-aligned block. x is the
    # smallest tensor (n_in=4), so this one reshuffle is cheap.
    x2 = jnp.transpose(x, (1, 0, 2)).reshape(T * B, n_in).astype(jnp.float32)

    # Precompute the gate scalars once (keeps sigmoid/EUP work off the scan path).
    s = jax.nn.sigmoid(params["dt"].astype(jnp.float32)).reshape(1, 1)
    sa = s * params["a"].astype(jnp.float32).reshape(1, 1)

    # Zero-pad weights/biases to lane-dense shapes; padded lanes stay exactly zero
    # through the recurrence, so results are bit-for-bit consistent with unpadded.
    we = _pad2(params["w_enc"], n_in, H)
    be = _pad2(params["b_enc"].reshape(1, -1), 1, H)
    wr = _pad2(params["w_rec"], H, H)
    br = _pad2(params["b_rec"].reshape(1, -1), 1, H)
    wd = _pad2(params["w_dec"], H, O)
    bd = _pad2(params["b_dec"].reshape(1, -1), 1, O)

    smem = pl.BlockSpec(memory_space=pltpu.MemorySpace.SMEM)
    vmem = pl.BlockSpec(memory_space=pltpu.MemorySpace.VMEM)

    kernel = functools.partial(
        _prnn_kernel, seq_len=T, batch=B,
        unroll=True if T <= 64 else 8,     # full unroll for short sequences
    )

    y_pad = pl.pallas_call(
        kernel,
        out_shape=jax.ShapeDtypeStruct((B, O), jnp.float32),
        in_specs=[smem, smem, vmem, vmem, vmem, vmem, vmem, vmem, vmem],
        out_specs=vmem,
        scratch_shapes=[pltpu.VMEM((T * B, H), jnp.float32)],   # encoder slab
    )(s, sa, x2, we, be, wr, br, wd, bd)

    return y_pad[None, :, :n_out]


def prnn_reference(x, params):
    """Pure-JAX reference mirroring the PyTorch forward."""
    x_tm = jnp.transpose(x, (1, 0, 2))
    B = x.shape[0]
    n_hid = params["w_enc"].shape[1]
    s = jax.nn.sigmoid(params["dt"][0])
    a = params["a"][0]
    h = jnp.zeros((1, B, n_hid), jnp.float32)
    for i in range(x_tm.shape[0]):
        pre = (x_tm[i] @ params["w_enc"] + params["b_enc"]
               + h @ params["w_rec"] + params["b_rec"])
        h = (1.0 - s) * h + s * a * jnp.tanh(pre)
    return h @ params["w_dec"] + params["b_dec"]


def init_params(key, n_inputs, n_hidden, n_output, dt):
    """Deterministic init mimicking nn.Linear default (uniform +-1/sqrt(fan_in))."""
    ks = jax.random.split(key, 6)
    def lin(kw, kb, fan_in, fan_out):
        bound = 1.0 / jnp.sqrt(fan_in)
        w = jax.random.uniform(kw, (fan_in, fan_out), jnp.float32, -bound, bound)
        b = jax.random.uniform(kb, (fan_out,), jnp.float32, -bound, bound)
        return w, b
    w_enc, b_enc = lin(ks[0], ks[1], n_inputs, n_hidden)
    w_rec, b_rec = lin(ks[2], ks[3], n_hidden, n_hidden)
    w_dec, b_dec = lin(ks[4], ks[5], n_hidden, n_output)
    return {
        "dt": jnp.array([dt], jnp.float32),
        "a": jnp.array([1.0], jnp.float32),
        "w_enc": w_enc, "b_enc": b_enc,
        "w_rec": w_rec, "b_rec": b_rec,
        "w_dec": w_dec, "b_dec": b_dec,
    }


if __name__ == "__main__":
    # Small shapes consistent with the module. NOTE: the PyTorch forward hard-codes
    # h1 = zeros(1, BATCH_SIZE, n_hidden), which only broadcasts correctly when
    # batch == BATCH_SIZE; here BATCH_SIZE (== batch) = 8.
    n_inputs, n_hidden, n_output = 4, 32, 4
    batch, seq = 8, 8
    dt = 0.1

    key = jax.random.PRNGKey(0)
    kx, kp = jax.random.split(key)
    x = jax.random.normal(kx, (batch, seq, n_inputs), jnp.float32)
    params = init_params(kp, n_inputs, n_hidden, n_output, dt)

    y = prnn_forward(x, params)
    y = jax.block_until_ready(y)

    y_ref = prnn_reference(x, params)
    assert y.shape == (1, batch, n_output)
    assert jnp.allclose(y, y_ref, rtol=1e-4, atol=1e-4), "mismatch vs pure-JAX reference"

    print("KERNEL_OK")
</pallas_src>

<mosaic_0001>
module attributes {stable_mosaic.version = 11 : i64} {
  func.func @_prnn_kernel(%arg0: memref<1x1xf32, #tpu.memory_space<smem>>, %arg1: memref<1x1xf32, #tpu.memory_space<smem>>, %arg2: memref<64x4xf32, #tpu.memory_space<vmem>>, %arg3: memref<4x128xf32, #tpu.memory_space<vmem>>, %arg4: memref<1x128xf32, #tpu.memory_space<vmem>>, %arg5: memref<128x128xf32, #tpu.memory_space<vmem>>, %arg6: memref<1x128xf32, #tpu.memory_space<vmem>>, %arg7: memref<128x128xf32, #tpu.memory_space<vmem>>, %arg8: memref<1x128xf32, #tpu.memory_space<vmem>>, %arg9: memref<8x128xf32, #tpu.memory_space<vmem>>, %arg10: memref<64x128xf32, #tpu.memory_space<vmem>>) attributes {dimension_semantics = [], scalar_prefetch = 0 : i64, scratch_operands = 1 : i64, tpu.core_type = #tpu.core_type<tc>} {
    %c0 = arith.constant 0 : index
    %c0_0 = arith.constant 0 : index
    %0 = vector.load %arg2[%c0, %c0_0] : memref<64x4xf32, #tpu.memory_space<vmem>>, vector<64x4xf32>
    %c0_1 = arith.constant 0 : index
    %c0_2 = arith.constant 0 : index
    %1 = vector.load %arg3[%c0_1, %c0_2] : memref<4x128xf32, #tpu.memory_space<vmem>>, vector<4x128xf32>
    %cst = arith.constant dense<0.000000e+00> : vector<64x128xf32>
    %2 = tpu.matmul %0, %1, %cst {dimension_numbers = #tpu.dot_dimension_numbers<[1], [0], [0], [1], [0, 0, 1, 1], [], []>} : vector<64x4xf32>, vector<4x128xf32>, vector<64x128xf32> -> vector<64x128xf32>
    %c0_3 = arith.constant 0 : index
    %c0_4 = arith.constant 0 : index
    %3 = vector.load %arg4[%c0_3, %c0_4] : memref<1x128xf32, #tpu.memory_space<vmem>>, vector<1x128xf32>
    %4 = vector.broadcast %3 : vector<1x128xf32> to vector<64x128xf32>
    %5 = arith.addf %2, %4 : vector<64x128xf32>
    %c0_5 = arith.constant 0 : index
    %c0_6 = arith.constant 0 : index
    %6 = vector.load %arg6[%c0_5, %c0_6] : memref<1x128xf32, #tpu.memory_space<vmem>>, vector<1x128xf32>
    %7 = vector.broadcast %6 : vector<1x128xf32> to vector<64x128xf32>
    %8 = arith.addf %5, %7 : vector<64x128xf32>
    %c0_7 = arith.constant 0 : index
    %c0_8 = arith.constant 0 : index
    %9 = vector.load %arg10[%c0_7, %c0_8] : memref<64x128xf32, #tpu.memory_space<vmem>>, vector<64x128xf32>
    tpu.vector_store %arg10[%c0_7, %c0_8], %8 {strides = array<i32>} : memref<64x128xf32, #tpu.memory_space<vmem>>, vector<64x128xf32>,
    %c0_9 = arith.constant 0 : index
    %c0_10 = arith.constant 0 : index
    %10 = memref.load %arg0[%c0_9, %c0_10] : memref<1x1xf32, #tpu.memory_space<smem>>
    %cst_11 = arith.constant 1.000000e+00 : f32
    %11 = arith.subf %cst_11, %10 : f32
    %12 = vector.broadcast %11 : f32 to vector<8x128xf32>
    %c0_12 = arith.constant 0 : index
    %c0_13 = arith.constant 0 : index
    %13 = memref.load %arg1[%c0_12, %c0_13] : memref<1x1xf32, #tpu.memory_space<smem>>
    %14 = vector.broadcast %13 : f32 to vector<8x128xf32>
    %cst_14 = arith.constant 0.000000e+00 : f32
    %15 = vector.broadcast %cst_14 : f32 to vector<8x128xf32>
    %c0_i32 = arith.constant 0 : i32
    %c8_i32 = arith.constant 8 : i32
    %16 = arith.muli %c0_i32, %c8_i32 : i32
    %17 = tpu.assume_multiple %16, 8 : i32
    %18 = arith.index_cast %17 : i32 to index
    %c0_15 = arith.constant 0 : index
    %19 = vector.load %arg10[%18, %c0_15] : memref<64x128xf32, #tpu.memory_space<vmem>>, vector<8x128xf32>
    %c0_16 = arith.constant 0 : index
    %c0_17 = arith.constant 0 : index
    %20 = vector.load %arg5[%c0_16, %c0_17] : memref<128x128xf32, #tpu.memory_space<vmem>>, vector<128x128xf32>
    %cst_18 = arith.constant dense<0.000000e+00> : vector<8x128xf32>
    %21 = tpu.matmul %15, %20, %cst_18 {dimension_numbers = #tpu.dot_dimension_numbers<[1], [0], [0], [1], [0, 0, 1, 1], [], []>} : vector<8x128xf32>, vector<128x128xf32>, vector<8x128xf32> -> vector<8x128xf32>
    %22 = arith.addf %19, %21 : vector<8x128xf32>
    %23 = arith.mulf %12, %15 : vector<8x128xf32>
    %24 = math.tanh %22 : vector<8x128xf32>
    %25 = arith.mulf %14, %24 : vector<8x128xf32>
    %26 = arith.addf %23, %25 : vector<8x128xf32>
    %c1_i32 = arith.constant 1 : i32
    %c8_i32_19 = arith.constant 8 : i32
    %27 = arith.muli %c1_i32, %c8_i32_19 : i32
    %28 = tpu.assume_multiple %27, 8 : i32
    %29 = arith.index_cast %28 : i32 to index
    %c0_20 = arith.constant 0 : index
    %30 = vector.load %arg10[%29, %c0_20] : memref<64x128xf32, #tpu.memory_space<vmem>>, vector<8x128xf32>
    %c0_21 = arith.constant 0 : index
    %c0_22 = arith.constant 0 : index
    %31 = vector.load %arg5[%c0_21, %c0_22] : memref<128x128xf32, #tpu.memory_space<vmem>>, vector<128x128xf32>
    %cst_23 = arith.constant dense<0.000000e+00> : vector<8x128xf32>
    %32 = tpu.matmul %26, %31, %cst_23 {dimension_numbers = #tpu.dot_dimension_numbers<[1], [0], [0], [1], [0, 0, 1, 1], [], []>} : vector<8x128xf32>, vector<128x128xf32>, vector<8x128xf32> -> vector<8x128xf32>
    %33 = arith.addf %30, %32 : vector<8x128xf32>
    %34 = arith.mulf %12, %26 : vector<8x128xf32>
    %35 = math.tanh %33 : vector<8x128xf32>
    %36 = arith.mulf %14, %35 : vector<8x128xf32>
    %37 = arith.addf %34, %36 : vector<8x128xf32>
    %c2_i32 = arith.constant 2 : i32
    %c8_i32_24 = arith.constant 8 : i32
    %38 = arith.muli %c2_i32, %c8_i32_24 : i32
    %39 = tpu.assume_multiple %38, 8 : i32
    %40 = arith.index_cast %39 : i32 to index
    %c0_25 = arith.constant 0 : index
    %41 = vector.load %arg10[%40, %c0_25] : memref<64x128xf32, #tpu.memory_space<vmem>>, vector<8x128xf32>
    %c0_26 = arith.constant 0 : index
    %c0_27 = arith.constant 0 : index
    %42 = vector.load %arg5[%c0_26, %c0_27] : memref<128x128xf32, #tpu.memory_space<vmem>>, vector<128x128xf32>
    %cst_28 = arith.constant dense<0.000000e+00> : vector<8x128xf32>
    %43 = tpu.matmul %37, %42, %cst_28 {dimension_numbers = #tpu.dot_dimension_numbers<[1], [0], [0], [1], [0, 0, 1, 1], [], []>} : vector<8x128xf32>, vector<128x128xf32>, vector<8x128xf32> -> vector<8x128xf32>
    %44 = arith.addf %41, %43 : vector<8x128xf32>
    %45 = arith.mulf %12, %37 : vector<8x128xf32>
    %46 = math.tanh %44 : vector<8x128xf32>
    %47 = arith.mulf %14, %46 : vector<8x128xf32>
    %48 = arith.addf %45, %47 : vector<8x128xf32>
    %c3_i32 = arith.constant 3 : i32
    %c8_i32_29 = arith.constant 8 : i32
    %49 = arith.muli %c3_i32, %c8_i32_29 : i32
    %50 = tpu.assume_multiple %49, 8 : i32
    %51 = arith.index_cast %50 : i32 to index
    %c0_30 = arith.constant 0 : index
    %52 = vector.load %arg10[%51, %c0_30] : memref<64x128xf32, #tpu.memory_space<vmem>>, vector<8x128xf32>
    %c0_31 = arith.constant 0 : index
    %c0_32 = arith.constant 0 : index
    %53 = vector.load %arg5[%c0_31, %c0_32] : memref<128x128xf32, #tpu.memory_space<vmem>>, vector<128x128xf32>
    %cst_33 = arith.constant dense<0.000000e+00> : vector<8x128xf32>
    %54 = tpu.matmul %48, %53, %cst_33 {dimension_numbers = #tpu.dot_dimension_numbers<[1], [0], [0], [1], [0, 0, 1, 1], [], []>} : vector<8x128xf32>, vector<128x128xf32>, vector<8x128xf32> -> vector<8x128xf32>
    %55 = arith.addf %52, %54 : vector<8x128xf32>
    %56 = arith.mulf %12, %48 : vector<8x128xf32>
    %57 = math.tanh %55 : vector<8x128xf32>
    %58 = arith.mulf %14, %57 : vector<8x128xf32>
    %59 = arith.addf %56, %58 : vector<8x128xf32>
    %c4_i32 = arith.constant 4 : i32
    %c8_i32_34 = arith.constant 8 : i32
    %60 = arith.muli %c4_i32, %c8_i32_34 : i32
    %61 = tpu.assume_multiple %60, 8 : i32
    %62 = arith.index_cast %61 : i32 to index
    %c0_35 = arith.constant 0 : index
    %63 = vector.load %arg10[%62, %c0_35] : memref<64x128xf32, #tpu.memory_space<vmem>>, vector<8x128xf32>
    %c0_36 = arith.constant 0 : index
    %c0_37 = arith.constant 0 : index
    %64 = vector.load %arg5[%c0_36, %c0_37] : memref<128x128xf32, #tpu.memory_space<vmem>>, vector<128x128xf32>
    %cst_38 = arith.constant dense<0.000000e+00> : vector<8x128xf32>
    %65 = tpu.matmul %59, %64, %cst_38 {dimension_numbers = #tpu.dot_dimension_numbers<[1], [0], [0], [1], [0, 0, 1, 1], [], []>} : vector<8x128xf32>, vector<128x128xf32>, vector<8x128xf32> -> vector<8x128xf32>
    %66 = arith.addf %63, %65 : vector<8x128xf32>
    %67 = arith.mulf %12, %59 : vector<8x128xf32>
    %68 = math.tanh %66 : vector<8x128xf32>
    %69 = arith.mulf %14, %68 : vector<8x128xf32>
    %70 = arith.addf %67, %69 : vector<8x128xf32>
    %c5_i32 = arith.constant 5 : i32
    %c8_i32_39 = arith.constant 8 : i32
    %71 = arith.muli %c5_i32, %c8_i32_39 : i32
    %72 = tpu.assume_multiple %71, 8 : i32
    %73 = arith.index_cast %72 : i32 to index
    %c0_40 = arith.constant 0 : index
    %74 = vector.load %arg10[%73, %c0_40] : memref<64x128xf32, #tpu.memory_space<vmem>>, vector<8x128xf32>
    %c0_41 = arith.constant 0 : index
    %c0_42 = arith.constant 0 : index
    %75 = vector.load %arg5[%c0_41, %c0_42] : memref<128x128xf32, #tpu.memory_space<vmem>>, vector<128x128xf32>
    %cst_43 = arith.constant dense<0.000000e+00> : vector<8x128xf32>
    %76 = tpu.matmul %70, %75, %cst_43 {dimension_numbers = #tpu.dot_dimension_numbers<[1], [0], [0], [1], [0, 0, 1, 1], [], []>} : vector<8x128xf32>, vector<128x128xf32>, vector<8x128xf32> -> vector<8x128xf32>
    %77 = arith.addf %74, %76 : vector<8x128xf32>
    %78 = arith.mulf %12, %70 : vector<8x128xf32>
    %79 = math.tanh %77 : vector<8x128xf32>
    %80 = arith.mulf %14, %79 : vector<8x128xf32>
    %81 = arith.addf %78, %80 : vector<8x128xf32>
    %c6_i32 = arith.constant 6 : i32
    %c8_i32_44 = arith.constant 8 : i32
    %82 = arith.muli %c6_i32, %c8_i32_44 : i32
    %83 = tpu.assume_multiple %82, 8 : i32
    %84 = arith.index_cast %83 : i32 to index
    %c0_45 = arith.constant 0 : index
    %85 = vector.load %arg10[%84, %c0_45] : memref<64x128xf32, #tpu.memory_space<vmem>>, vector<8x128xf32>
    %c0_46 = arith.constant 0 : index
    %c0_47 = arith.constant 0 : index
    %86 = vector.load %arg5[%c0_46, %c0_47] : memref<128x128xf32, #tpu.memory_space<vmem>>, vector<128x128xf32>
    %cst_48 = arith.constant dense<0.000000e+00> : vector<8x128xf32>
    %87 = tpu.matmul %81, %86, %cst_48 {dimension_numbers = #tpu.dot_dimension_numbers<[1], [0], [0], [1], [0, 0, 1, 1], [], []>} : vector<8x128xf32>, vector<128x128xf32>, vector<8x128xf32> -> vector<8x128xf32>
    %88 = arith.addf %85, %87 : vector<8x128xf32>
    %89 = arith.mulf %12, %81 : vector<8x128xf32>
    %90 = math.tanh %88 : vector<8x128xf32>
    %91 = arith.mulf %14, %90 : vector<8x128xf32>
    %92 = arith.addf %89, %91 : vector<8x128xf32>
    %c7_i32 = arith.constant 7 : i32
    %c8_i32_49 = arith.constant 8 : i32
    %93 = arith.muli %c7_i32, %c8_i32_49 : i32
    %94 = tpu.assume_multiple %93, 8 : i32
    %95 = arith.index_cast %94 : i32 to index
    %c0_50 = arith.constant 0 : index
    %96 = vector.load %arg10[%95, %c0_50] : memref<64x128xf32, #tpu.memory_space<vmem>>, vector<8x128xf32>
    %c0_51 = arith.constant 0 : index
    %c0_52 = arith.constant 0 : index
    %97 = vector.load %arg5[%c0_51, %c0_52] : memref<128x128xf32, #tpu.memory_space<vmem>>, vector<128x128xf32>
    %cst_53 = arith.constant dense<0.000000e+00> : vector<8x128xf32>
    %98 = tpu.matmul %92, %97, %cst_53 {dimension_numbers = #tpu.dot_dimension_numbers<[1], [0], [0], [1], [0, 0, 1, 1], [], []>} : vector<8x128xf32>, vector<128x128xf32>, vector<8x128xf32> -> vector<8x128xf32>
    %99 = arith.addf %96, %98 : vector<8x128xf32>
    %100 = arith.mulf %12, %92 : vector<8x128xf32>
    %101 = math.tanh %99 : vector<8x128xf32>
    %102 = arith.mulf %14, %101 : vector<8x128xf32>
    %103 = arith.addf %100, %102 : vector<8x128xf32>
    %c8_i32_54 = arith.constant 8 : i32
    %c0_55 = arith.constant 0 : index
    %c0_56 = arith.constant 0 : index
    %104 = vector.load %arg7[%c0_55, %c0_56] : memref<128x128xf32, #tpu.memory_space<vmem>>, vector<128x128xf32>
    %cst_57 = arith.constant dense<0.000000e+00> : vector<8x128xf32>
    %105 = tpu.matmul %103, %104, %cst_57 {dimension_numbers = #tpu.dot_dimension_numbers<[1], [0], [0], [1], [0, 0, 1, 1], [], []>} : vector<8x128xf32>, vector<128x128xf32>, vector<8x128xf32> -> vector<8x128xf32>
    %c0_58 = arith.constant 0 : index
    %c0_59 = arith.constant 0 : index
    %106 = vector.load %arg8[%c0_58, %c0_59] : memref<1x128xf32, #tpu.memory_space<vmem>>, vector<1x128xf32>
    %107 = vector.broadcast %106 : vector<1x128xf32> to vector<8x128xf32>
    %108 = arith.addf %105, %107 : vector<8x128xf32>
    %c0_60 = arith.constant 0 : index
    %c0_61 = arith.constant 0 : index
    %109 = vector.load %arg9[%c0_60, %c0_61] : memref<8x128xf32, #tpu.memory_space<vmem>>, vector<8x128xf32>
    tpu.vector_store %arg9[%c0_60, %c0_61], %108 {strides = array<i32>} : memref<8x128xf32, #tpu.memory_space<vmem>>, vector<8x128xf32>,
    return
  }
}

</mosaic_0001>

<bundles_post_ra>
// kernel: prnn_forward.1
= control target key start
LH: loop header
LB: loop body
LE: loop exit
PB: predicated region body
PF: predicated region fallthrough
CT: control target
= control target key end

     0   :  { %v1679_v0 = vmov 0.0|0.0   ;;  %vm1680_vm0 = vmmov 0   ;;  %v1681_v6 = vmov 0.0   ;;  %vm75_vm1 = vcmask 1043456   ;;  %s2104_s5 = inlined_call_operand.vmem [shape: f32[128,128], index: 5, kind: input, shape index: {}]   ;;  %s2105_s3 = inlined_call_operand.vmem [shape: f32[4,128], index: 3, kind: input, shape index: {}]   ;;  %s2106_s2 = inlined_call_operand.vmem [shape: f32[64,4], index: 2, kind: input, shape index: {}]   ;;  %s2107_s4 = inlined_call_operand.vmem [shape: f32[1,128], index: 4, kind: input, shape index: {}]   ;;  %s2108_s6 = inlined_call_operand.vmem [shape: f32[1,128], index: 6, kind: input, shape index: {}]   ;;  %s2109_s0 = inlined_call_operand.<no memory space> [shape: f32[1,1], index: 0, kind: input, shape index: {}]   ;;  %s2110_s1 = inlined_call_operand.<no memory space> [shape: f32[1,1], index: 1, kind: input, shape index: {}]   ;;  %s2111_s7 = inlined_call_operand.vmem [shape: f32[128,128], index: 7, kind: input, shape index: {}]   ;;  %s2112_s8 = inlined_call_operand.vmem [shape: f32[1,128], index: 8, kind: input, shape index: {}]   ;;  %s2113_s9 = inlined_call_operand.vmem [shape: f32[8,128], index: 9, kind: output, shape index: {}]  }
   0x1   :  { %1444 = vmatprep.subr.bf16.mxu1 %v1679_v0  ;;  %v213_v1 = vld [vmem:[%s2104_s5] sm:$0xff]  ;;  %v214_v2 = vld [vmem:[%s2104_s5 + $0x8] sm:$0xff]  ;;  %v215_v3 = vld [vmem:[%s2104_s5 + $0x10] sm:$0xff]  ;;  %1161 = vmatprep.mubr.msk.f32.mxu1 %vm1680_vm0, %v1681_v6  ;;  %vm50_vm2 = vcmask 31744   ;;  %s208_s19 = ssub.f32 1.0, %s2109_s0  ;;  %v1908_v45 = vstv %s2110_s1 }
   0x2   :  { %v1742_v4 = vpack.c.bf16 %v214_v2, %v213_v1  ;;  %v216_v5 = vld [vmem:[%s2104_s5 + $0x18] sm:$0xff]  ;;  %v217_v8 = vld [vmem:[%s2104_s5 + $0x20] sm:$0xff]  ;;  %v218_v9 = vld [vmem:[%s2104_s5 + $0x28] sm:$0xff] }
   0x3   :  { %v1750_v7 = vpack.c.bf16 %v216_v5, %v215_v3  ;;  %v42_v10 = vld [vmem:[%s2105_s3] sm:$0xf]  ;;  %v35_v12 = vld [vmem:[%s2106_s2 + $0x8] sm:$0xff]  ;;  %v1770_v13 = vpack.c.bf16 %v218_v9, %v217_v8  ;;  %v219_v14 = vld [vmem:[%s2104_s5 + $0x30] sm:$0xff]  ;;  %v1903_v44 = vstv %s208_s19 }
   0x4   :  { %1446 = vmatpush3.bf16.msra.mxu1 %v1742_v4  ;;  %v34_v11 = vld [vmem:[%s2106_s2] sm:$0xff]  ;;  %1115 = vmatprep.subr.msk.mxu0 %vm75_vm1, %v42_v10  ;;  %v220_v15 = vld [vmem:[%s2104_s5 + $0x38] sm:$0xff]  ;;  %v222_v18 = vld [vmem:[%s2104_s5 + $0x48] sm:$0xff]  ;;  %v300_v46 = vmul.f32 0.0, %v1903_v44 }
   0x5   :  { %1447 = vmatprep.subr.bf16.mxu1 %v1679_v0  ;;  %1117 = vmatprep.mubr.msk.f32.mxu0 %vm50_vm2, %v34_v11  ;;  %v1784_v16 = vpack.c.bf16 %v220_v15, %v219_v14  ;;  %v221_v17 = vld [vmem:[%s2104_s5 + $0x40] sm:$0xff]  ;;  %v223_v20 = vld [vmem:[%s2104_s5 + $0x50] sm:$0xff]  ;;  %v224_v21 = vld [vmem:[%s2104_s5 + $0x58] sm:$0xff] }
   0x6   :  { %1116 = vmatpush3.msk.msra.mxu0 %vm75_vm1, %v42_v10  ;;  %v1796_v19 = vpack.c.bf16 %v222_v18, %v221_v17  ;;  %v1808_v22 = vpack.c.bf16 %v224_v21, %v223_v20  ;;  %v225_v23 = vld [vmem:[%s2104_s5 + $0x60] sm:$0xff]  ;;  %v226_v24 = vld [vmem:[%s2104_s5 + $0x68] sm:$0xff]  ;;  %v227_v26 = vld [vmem:[%s2104_s5 + $0x70] sm:$0xff] }
   0x7   :  { %1118 = vmatmul.mubr.msk.f32.vlgmr.msra.gmra.mrb[0].mxu0 %vm50_vm2, %v35_v12  ;;  %1468 = vmatprep.subr.bf16.mxu0 %v1679_v0  ;;  %v1820_v25 = vpack.c.bf16 %v226_v24, %v225_v23  ;;  %v228_v27 = vld [vmem:[%s2104_s5 + $0x78] sm:$0xff]  ;;  %v36_v29 = vld [vmem:[%s2106_s2 + $0x10] sm:$0xff]  ;;  %v38_v31 = vld [vmem:[%s2106_s2 + $0x20] sm:$0xff] }
   0x8   :  { %1449 = vmatpush3.bf16.msra.mxu1 %v1750_v7  ;;  %1470 = vmatpush3.bf16.msra.mxu0 %v1742_v4  ;;  %v1832_v28 = vpack.c.bf16 %v228_v27, %v227_v26  ;;  %v37_v30 = vld [vmem:[%s2106_s2 + $0x18] sm:$0xff]  ;;  %v39_v32 = vld [vmem:[%s2106_s2 + $0x28] sm:$0xff]  ;;  %v40_v33 = vld [vmem:[%s2106_s2 + $0x30] sm:$0xff] }
   0x9   :  { %1450 = vmatprep.subr.bf16.mxu1 %v1679_v0  ;;  %1471 = vmatprep.subr.bf16.mxu0 %v1679_v0  ;;  %v41_v34 = vld [vmem:[%s2106_s2 + $0x38] sm:$0xff]  ;;  %v1891_v37 = vld [vmem:[%s2107_s4] ss:$0 sm:$0xff] }
   0xa   :  { %1120 = vmatprep.mubr.msk.f32.mxu0 %vm50_vm2, %v36_v29  ;;  %v1897_v39 = vld [vmem:[%s2108_s6] ss:$0 sm:$0xff] }
   0xb   :  { %1121 = vmatmul.mubr.msk.f32.gmra.mrb[2].mxu0 %vm50_vm2, %v37_v30 }
   0xc   :  { %1452 = vmatpush3.bf16.msra.mxu1 %v1770_v13  ;;  %1473 = vmatpush3.bf16.msra.mxu0 %v1750_v7 }
   0xd   :  { %1453 = vmatprep.subr.bf16.mxu1 %v1679_v0  ;;  %1474 = vmatprep.subr.bf16.mxu0 %v1679_v0 }
   0xe   :  { %1123 = vmatprep.mubr.msk.f32.mxu0 %vm50_vm2, %v38_v31 }
   0xf   :  { %1124 = vmatmul.mubr.msk.f32.gmra.mrb[4].mxu0 %vm50_vm2, %v39_v32 }
  0x10   :  { %1455 = vmatpush3.bf16.msra.mxu1 %v1784_v16  ;;  %1476 = vmatpush3.bf16.msra.mxu0 %v1770_v13 }
  0x11   :  { %1456 = vmatprep.subr.bf16.mxu1 %v1679_v0  ;;  %1477 = vmatprep.subr.bf16.mxu0 %v1679_v0 }
  0x12   :  { %1126 = vmatprep.mubr.msk.f32.mxu0 %vm50_vm2, %v40_v33 }
  0x13   :  { %1127 = vmatmul.mubr.msk.f32.gmra.mrb[6].mxu0 %vm50_vm2, %v41_v34 }
  0x14   :  { %1458 = vmatpush3.bf16.msra.mxu1 %v1796_v19  ;;  %1479 = vmatpush3.bf16.msra.mxu0 %v1784_v16 }
  0x15   :  { %1459 = vmatprep.subr.bf16.mxu1 %v1679_v0  ;;  %1480 = vmatprep.subr.bf16.mxu0 %v1679_v0 }
  0x16   :  { %1196 = vmatprep.mubr.msk.f32.mxu0 %vm1680_vm0, %v1681_v6 }
  0x18   :  { %1461 = vmatpush3.bf16.msra.mxu1 %v1808_v22  ;;  %1482 = vmatpush3.bf16.msra.mxu0 %v1796_v19 }
  0x19   :  { %1462 = vmatprep.subr.bf16.mxu1 %v1679_v0  ;;  %1483 = vmatprep.subr.bf16.mxu0 %v1679_v0 }
  0x1c   :  { %1464 = vmatpush3.bf16.msra.mxu1 %v1820_v25  ;;  %1485 = vmatpush3.bf16.msra.mxu0 %v1808_v22 }
  0x1d   :  { %1465 = vmatprep.subr.bf16.mxu1 %v1679_v0  ;;  %1486 = vmatprep.subr.bf16.mxu0 %v1679_v0 }
  0x20   :  { %1467 = vmatpush3.bf16.msra.mxu1 %v1832_v28  ;;  %1488 = vmatpush3.bf16.msra.mxu0 %v1820_v25 }
  0x21   :  { %1492 = vmatprep.subr.bf16.mxu1 %v1679_v0  ;;  %1489 = vmatprep.subr.bf16.mxu0 %v1679_v0 }
  0x23   :  { %1162 = vmatmul.mubr.f32.vlgmr.msra.gmra.mrb[0].mxu1 %v1681_v6 }
  0x24   :  { %1494 = vmatpush3.bf16.msra.mxu1 %v1742_v4  ;;  %1231 = vmatprep.mubr.msk.f32.mxu1 %vm1680_vm0, %v1681_v6 }
  0x25   :  { %1495 = vmatprep.subr.bf16.mxu1 %v1679_v0  ;;  %1491 = vmatpush3.bf16.msra.mxu0 %v1832_v28 }
  0x26   :  { %1516 = vmatprep.subr.bf16.mxu0 %v1679_v0 }
  0x28   :  { %1497 = vmatpush3.bf16.msra.mxu1 %v1750_v7 }
  0x29   :  { %1498 = vmatprep.subr.bf16.mxu1 %v1679_v0 }
  0x2c   :  { %1500 = vmatpush3.bf16.msra.mxu1 %v1770_v13 }
  0x2d   :  { %1501 = vmatprep.subr.bf16.mxu1 %v1679_v0 }
  0x30   :  { %1503 = vmatpush3.bf16.msra.mxu1 %v1784_v16 }
  0x31   :  { %1504 = vmatprep.subr.bf16.mxu1 %v1679_v0 }
  0x34   :  { %1506 = vmatpush3.bf16.msra.mxu1 %v1796_v19 }
  0x35   :  { %1507 = vmatprep.subr.bf16.mxu1 %v1679_v0 }
  0x38   :  { %1509 = vmatpush3.bf16.msra.mxu1 %v1808_v22 }
  0x39   :  { %1510 = vmatprep.subr.bf16.mxu1 %v1679_v0 }
  0x3c   :  { %1512 = vmatpush3.bf16.msra.mxu1 %v1820_v25 }
  0x3d   :  { %1513 = vmatprep.subr.bf16.mxu1 %v1679_v0 }
  0x40   :  { %1515 = vmatpush3.bf16.msra.mxu1 %v1832_v28 }
  0x41   :  { %1540 = vmatprep.subr.bf16.mxu1 %v1679_v0 }
  0xda   :  { %v1119_v35 = vpop.f32.mrb[0].mxu0 }
  0xdb   :  { %v145_v36 = vpop.f32.mrb[1].mxu0  ;;  %v151_v56 = vadd.f32 %v1119_v35, %v1891_v37 }
  0xdc   :  { %v146_v38 = vadd.f32 %v1891_v37, %v145_v36 }
  0xdd   :  { %v192_v57 = vadd.f32 %v1897_v39, %v151_v56 }
  0xde   :  { %v191_v40 = vadd.f32 %v1897_v39, %v146_v38  ;;  %v1122_v50 = vpop.f32.mrb[2].mxu0 }
  0xdf   :  { %v155_v51 = vpop.f32.mrb[3].mxu0  ;;  %v161_v15 = vadd.f32 %v1122_v50, %v1891_v37 }
  0xe0   :  { %v156_v2 = vadd.f32 %v1891_v37, %v155_v51  ;;  %v849_v51 = vld [vmem:[%s2111_s7 + $0x30] sm:$0xff] }
  0xe1   :  { %v194_v17 = vadd.f32 %v1897_v39, %v161_v15  ;;  %v858_v15 = vld [vmem:[%s2111_s7 + $0x78] sm:$0xff] }
  0xe2   :  { %v1930_v52 = vpop.f32.mrb[4].mxu0  ;;  %v193_v3 = vadd.f32 %v1897_v39, %v156_v2  ;;  %v851_v2 = vld [vmem:[%s2111_s7 + $0x40] sm:$0xff] }
  0xe3   :  { %v1932_v53 = vpop.f32.mrb[5].mxu0 }
  0xe4   :  { %v166_v29 = vadd.f32 %v1891_v37, %v1932_v53 }
  0xe6   :  { %v1934_v54 = vpop.f32.mrb[6].mxu0  ;;  %v195_v30 = vadd.f32 %v1897_v39, %v166_v29 }
  0xe7   :  { %v1936_v55 = vpop.f32.mrb[7].mxu0 }
  0xe8   :  { %v176_v56 = vadd.f32 %v1891_v37, %v1936_v55  ;;  %v852_v55 = vld [vmem:[%s2111_s7 + $0x48] sm:$0xff] }
  0xf6   :  { %v295_v41 = vpop.f32.mrb[0].mxu1 }
  0xf7   :  { %v299_v42 = vadd.f32 %v295_v41, %v191_v40  ;;  %v1163_v43 = vpop.f32.mrb[1].mxu1 }
  0xf8   :  { %v845_v43 = vld [vmem:[%s2111_s7 + $0x10] sm:$0xff] }
  0xf9   :  { %1663 = vtanh.f32 %v299_v42 }
 0x103   :  { %v1664_v47 = vpop.eup %1663 }
 0x104   :  { %v302_v48 = vmul.f32 %v1664_v47, %v1908_v45  ;;  %v846_v47 = vld [vmem:[%s2111_s7 + $0x18] sm:$0xff] }
 0x106   :  { %v303_v49 = vadd.f32 %v302_v48, %v300_v46  ;;  %v1640_v48 = vpack.c.bf16 %v846_v47, %v845_v43 }
 0x108   :  { %1197 = vmatmul.mubr.f32.vlgmr.msra.gmra.mrb[8].mxu0 %v303_v49  ;;  %v377_v62 = vmul.f32 %v303_v49, %v1903_v44  ;;  %v848_v49 = vld [vmem:[%s2111_s7 + $0x28] sm:$0xff] }
 0x109   :  { %1518 = vmatpush3.bf16.msra.mxu0 %v1742_v4  ;;  %1266 = vmatprep.mubr.msk.f32.mxu0 %vm1680_vm0, %v1681_v6 }
 0x10a   :  { %1519 = vmatprep.subr.bf16.mxu0 %v1679_v0 }
 0x10d   :  { %1521 = vmatpush3.bf16.msra.mxu0 %v1750_v7 }
 0x10e   :  { %1522 = vmatprep.subr.bf16.mxu0 %v1679_v0 }
 0x111   :  { %1524 = vmatpush3.bf16.msra.mxu0 %v1770_v13 }
 0x112   :  { %1525 = vmatprep.subr.bf16.mxu0 %v1679_v0 }
 0x115   :  { %1527 = vmatpush3.bf16.msra.mxu0 %v1784_v16 }
 0x116   :  { %1528 = vmatprep.subr.bf16.mxu0 %v1679_v0 }
 0x119   :  { %1530 = vmatpush3.bf16.msra.mxu0 %v1796_v19 }
 0x11a   :  { %1531 = vmatprep.subr.bf16.mxu0 %v1679_v0 }
 0x11d   :  { %1533 = vmatpush3.bf16.msra.mxu0 %v1808_v22 }
 0x11e   :  { %1534 = vmatprep.subr.bf16.mxu0 %v1679_v0 }
 0x121   :  { %1536 = vmatpush3.bf16.msra.mxu0 %v1820_v25 }
 0x122   :  { %1537 = vmatprep.subr.bf16.mxu0 %v1679_v0 }
 0x125   :  { %1539 = vmatpush3.bf16.msra.mxu0 %v1832_v28 }
 0x126   :  { %1564 = vmatprep.subr.bf16.mxu0 %v1679_v0 }
 0x1db   :  { %v372_v58 = vpop.f32.mrb[8].mxu0 }
 0x1dc   :  { %v376_v59 = vadd.f32 %v372_v58, %v192_v57  ;;  %v1198_v60 = vpop.f32.mrb[9].mxu0  ;;  %v197_v57 = vadd.f32 %v1897_v39, %v176_v56 }
 0x1de   :  { %1665 = vtanh.f32 %v376_v59 }
 0x1e8   :  { %v1666_v61 = vpop.eup %1665 }
 0x1e9   :  { %v379_v63 = vmul.f32 %v1666_v61, %v1908_v45 }
 0x1eb   :  { %v380_v1 = vadd.f32 %v379_v63, %v377_v62 }
 0x1ed   :  { %1232 = vmatmul.mubr.f32.vlgmr.msra.gmra.mrb[2].mxu1 %v380_v1  ;;  %v454_v11 = vmul.f32 %v380_v1, %v1903_v44 }
 0x1ee   :  { %1542 = vmatpush3.bf16.msra.mxu1 %v1742_v4  ;;  %1301 = vmatprep.mubr.msk.f32.mxu1 %vm1680_vm0, %v1681_v6 }
 0x1ef   :  { %1543 = vmatprep.subr.bf16.mxu1 %v1679_v0 }
 0x1f2   :  { %1545 = vmatpush3.bf16.msra.mxu1 %v1750_v7 }
 0x1f3   :  { %1546 = vmatprep.subr.bf16.mxu1 %v1679_v0 }
 0x1f6   :  { %1548 = vmatpush3.bf16.msra.mxu1 %v1770_v13 }
 0x1f7   :  { %1549 = vmatprep.subr.bf16.mxu1 %v1679_v0 }
 0x1fa   :  { %1551 = vmatpush3.bf16.msra.mxu1 %v1784_v16 }
 0x1fb   :  { %1552 = vmatprep.subr.bf16.mxu1 %v1679_v0 }
 0x1fe   :  { %1554 = vmatpush3.bf16.msra.mxu1 %v1796_v19 }
 0x1ff   :  { %1555 = vmatprep.subr.bf16.mxu1 %v1679_v0 }
 0x202   :  { %1557 = vmatpush3.bf16.msra.mxu1 %v1808_v22 }
 0x203   :  { %1558 = vmatprep.subr.bf16.mxu1 %v1679_v0 }
 0x206   :  { %1560 = vmatpush3.bf16.msra.mxu1 %v1820_v25 }
 0x207   :  { %1561 = vmatprep.subr.bf16.mxu1 %v1679_v0 }
 0x20a   :  { %1563 = vmatpush3.bf16.msra.mxu1 %v1832_v28 }
 0x20b   :  { %1588 = vmatprep.subr.bf16.mxu1 %v1679_v0 }
 0x2c0   :  { %v449_v5 = vpop.f32.mrb[2].mxu1 }
 0x2c1   :  { %v453_v8 = vadd.f32 %v449_v5, %v193_v3  ;;  %v1233_v9 = vpop.f32.mrb[3].mxu1  ;;  %v1649_v3 = vpack.c.bf16 %v852_v55, %v851_v2  ;;  %v853_v5 = vld [vmem:[%s2111_s7 + $0x50] sm:$0xff] }
 0x2c3   :  { %1667 = vtanh.f32 %v453_v8  ;;  %v854_v8 = vld [vmem:[%s2111_s7 + $0x58] sm:$0xff] }
 0x2c4   :  { %v1652_v9 = vpack.c.bf16 %v854_v8, %v853_v5 }
 0x2cd   :  { %v1668_v10 = vpop.eup %1667 }
 0x2ce   :  { %v456_v12 = vmul.f32 %v1668_v10, %v1908_v45  ;;  %v855_v10 = vld [vmem:[%s2111_s7 + $0x60] sm:$0xff] }
 0x2d0   :  { %v457_v14 = vadd.f32 %v456_v12, %v454_v11  ;;  %v856_v11 = vld [vmem:[%s2111_s7 + $0x68] sm:$0xff] }
 0x2d1   :  { %v1655_v12 = vpack.c.bf16 %v856_v11, %v855_v10 }
 0x2d2   :  { %1267 = vmatmul.mubr.f32.vlgmr.msra.gmra.mrb[10].mxu0 %v457_v14  ;;  %v531_v24 = vmul.f32 %v457_v14, %v1903_v44  ;;  %v857_v14 = vld [vmem:[%s2111_s7 + $0x70] sm:$0xff] }
 0x2d3   :  { %1566 = vmatpush3.bf16.msra.mxu0 %v1742_v4  ;;  %1336 = vmatprep.mubr.msk.f32.mxu0 %vm1680_vm0, %v1681_v6 }
 0x2d4   :  { %1567 = vmatprep.subr.bf16.mxu0 %v1679_v0 }
 0x2d7   :  { %1569 = vmatpush3.bf16.msra.mxu0 %v1750_v7 }
 0x2d8   :  { %1570 = vmatprep.subr.bf16.mxu0 %v1679_v0 }
 0x2db   :  { %1572 = vmatpush3.bf16.msra.mxu0 %v1770_v13 }
 0x2dc   :  { %1573 = vmatprep.subr.bf16.mxu0 %v1679_v0 }
 0x2df   :  { %1575 = vmatpush3.bf16.msra.mxu0 %v1784_v16 }
 0x2e0   :  { %1576 = vmatprep.subr.bf16.mxu0 %v1679_v0 }
 0x2e3   :  { %1578 = vmatpush3.bf16.msra.mxu0 %v1796_v19 }
 0x2e4   :  { %1579 = vmatprep.subr.bf16.mxu0 %v1679_v0 }
 0x2e7   :  { %1581 = vmatpush3.bf16.msra.mxu0 %v1808_v22 }
 0x2e8   :  { %1582 = vmatprep.subr.bf16.mxu0 %v1679_v0 }
 0x2eb   :  { %1584 = vmatpush3.bf16.msra.mxu0 %v1820_v25 }
 0x2ec   :  { %1585 = vmatprep.subr.bf16.mxu0 %v1679_v0 }
 0x2ef   :  { %1587 = vmatpush3.bf16.msra.mxu0 %v1832_v28 }
 0x2f0   :  { %1612 = vmatprep.subr.bf16.mxu0 %v1679_v0 }
 0x3a5   :  { %v526_v18 = vpop.f32.mrb[10].mxu0 }
 0x3a6   :  { %v530_v20 = vadd.f32 %v526_v18, %v194_v17  ;;  %v1268_v21 = vpop.f32.mrb[11].mxu0  ;;  %v1658_v17 = vpack.c.bf16 %v858_v15, %v857_v14  ;;  %v181_v18 = vadd.f32 %v1934_v54, %v1891_v37 }
 0x3a8   :  { %1669 = vtanh.f32 %v530_v20  ;;  %v198_v20 = vadd.f32 %v1897_v39, %v181_v18 }
 0x3b2   :  { %v1670_v23 = vpop.eup %1669 }
 0x3b3   :  { %v533_v26 = vmul.f32 %v1670_v23, %v1908_v45 }
 0x3b5   :  { %v534_v27 = vadd.f32 %v533_v26, %v531_v24 }
 0x3b7   :  { %1302 = vmatmul.mubr.f32.vlgmr.msra.gmra.mrb[4].mxu1 %v534_v27  ;;  %v608_v35 = vmul.f32 %v534_v27, %v1903_v44 }
 0x3b8   :  { %1590 = vmatpush3.bf16.msra.mxu1 %v1742_v4  ;;  %1371 = vmatprep.mubr.msk.f32.mxu1 %vm1680_vm0, %v1681_v6 }
 0x3b9   :  { %1591 = vmatprep.subr.bf16.mxu1 %v1679_v0 }
 0x3bc   :  { %1593 = vmatpush3.bf16.msra.mxu1 %v1750_v7 }
 0x3bd   :  { %1594 = vmatprep.subr.bf16.mxu1 %v1679_v0 }
 0x3c0   :  { %1596 = vmatpush3.bf16.msra.mxu1 %v1770_v13 }
 0x3c1   :  { %1597 = vmatprep.subr.bf16.mxu1 %v1679_v0 }
 0x3c4   :  { %1599 = vmatpush3.bf16.msra.mxu1 %v1784_v16 }
 0x3c5   :  { %1600 = vmatprep.subr.bf16.mxu1 %v1679_v0 }
 0x3c8   :  { %1602 = vmatpush3.bf16.msra.mxu1 %v1796_v19 }
 0x3c9   :  { %1603 = vmatprep.subr.bf16.mxu1 %v1679_v0 }
 0x3cc   :  { %1605 = vmatpush3.bf16.msra.mxu1 %v1808_v22 }
 0x3cd   :  { %1606 = vmatprep.subr.bf16.mxu1 %v1679_v0 }
 0x3d0   :  { %1608 = vmatpush3.bf16.msra.mxu1 %v1820_v25 }
 0x3d1   :  { %1609 = vmatprep.subr.bf16.mxu1 %v1679_v0 }
 0x3d4   :  { %1611 = vmatpush3.bf16.msra.mxu1 %v1832_v28 }
 0x3d5   :  { %1636 = vmatprep.subr.bf16.mxu1 %v1679_v0 }
 0x48a   :  { %v603_v31 = vpop.f32.mrb[4].mxu1 }
 0x48b   :  { %v607_v32 = vadd.f32 %v603_v31, %v195_v30  ;;  %v1303_v33 = vpop.f32.mrb[5].mxu1 }
 0x48d   :  { %1671 = vtanh.f32 %v607_v32 }
 0x497   :  { %v1672_v34 = vpop.eup %1671 }
 0x498   :  { %v610_v36 = vmul.f32 %v1672_v34, %v1908_v45 }
 0x49a   :  { %v611_v38 = vadd.f32 %v610_v36, %v608_v35 }
 0x49c   :  { %1337 = vmatmul.mubr.f32.vlgmr.msra.gmra.mrb[12].mxu0 %v611_v38 }
 0x49d   :  { %1614 = vmatpush3.bf16.msra.mxu0 %v1742_v4  ;;  %1406 = vmatprep.mubr.msk.f32.mxu0 %vm1680_vm0, %v1681_v6  ;;  %v171_v4 = vadd.f32 %v1930_v52, %v1891_v37  ;;  %v850_v52 = vld [vmem:[%s2111_s7 + $0x38] sm:$0xff] }
 0x49e   :  { %1615 = vmatprep.subr.bf16.mxu0 %v1679_v0  ;;  %v1646_v53 = vpack.c.bf16 %v850_v52, %v849_v51 }
 0x4a1   :  { %1617 = vmatpush3.bf16.msra.mxu0 %v1750_v7  ;;  %v196_v7 = vadd.f32 %v1897_v39, %v171_v4 }
 0x4a2   :  { %1618 = vmatprep.subr.bf16.mxu0 %v1679_v0 }
 0x4a5   :  { %1620 = vmatpush3.bf16.msra.mxu0 %v1770_v13 }
 0x4a6   :  { %1621 = vmatprep.subr.bf16.mxu0 %v1679_v0 }
 0x4a9   :  { %1623 = vmatpush3.bf16.msra.mxu0 %v1784_v16 }
 0x4aa   :  { %1624 = vmatprep.subr.bf16.mxu0 %v1679_v0 }
 0x4ad   :  { %1626 = vmatpush3.bf16.msra.mxu0 %v1796_v19 }
 0x4ae   :  { %1627 = vmatprep.subr.bf16.mxu0 %v1679_v0 }
 0x4b1   :  { %1629 = vmatpush3.bf16.msra.mxu0 %v1808_v22  ;;  %v685_v22 = vmul.f32 %v611_v38, %v1903_v44 }
 0x4b2   :  { %1630 = vmatprep.subr.bf16.mxu0 %v1679_v0 }
 0x4b5   :  { %1632 = vmatpush3.bf16.msra.mxu0 %v1820_v25  ;;  %v843_v25 = vld [vmem:[%s2111_s7] sm:$0xff] }
 0x4b6   :  { %1633 = vmatprep.subr.bf16.mxu0 %v1679_v0 }
 0x4b9   :  { %1635 = vmatpush3.bf16.msra.mxu0 %v1832_v28  ;;  %v844_v28 = vld [vmem:[%s2111_s7 + $0x8] sm:$0xff] }
 0x4ba   :  { %v1637_v46 = vpack.c.bf16 %v844_v28, %v843_v25 }
 0x56f   :  { %v680_v13 = vpop.f32.mrb[12].mxu0 }
 0x570   :  { %v684_v16 = vadd.f32 %v680_v13, %v196_v7  ;;  %v1338_v19 = vpop.f32.mrb[13].mxu0 }
 0x572   :  { %1673 = vtanh.f32 %v684_v16 }
 0x57c   :  { %v1674_v40 = vpop.eup %1673 }
 0x57d   :  { %v687_v41 = vmul.f32 %v1674_v40, %v1908_v45 }
 0x57f   :  { %v688_v42 = vadd.f32 %v687_v41, %v685_v22 }
 0x581   :  { %1372 = vmatmul.mubr.f32.vlgmr.msra.gmra.mrb[6].mxu1 %v688_v42  ;;  %v762_v62 = vmul.f32 %v688_v42, %v1903_v44 }
 0x582   :  { %1441 = vmatprep.mubr.msk.f32.mxu1 %vm1680_vm0, %v1681_v6  ;;  %1638 = vmatpush3.bf16.msra.mxu1 %v1637_v46  ;;  %v847_v6 = vld [vmem:[%s2111_s7 + $0x20] sm:$0xff] }
 0x583   :  { %1639 = vmatprep.subr.bf16.mxu1 %v1679_v0  ;;  %v1643_v50 = vpack.c.bf16 %v848_v49, %v847_v6 }
 0x586   :  { %1641 = vmatpush3.bf16.msra.mxu1 %v1640_v48 }
 0x587   :  { %1642 = vmatprep.subr.bf16.mxu1 %v1679_v0 }
 0x58a   :  { %1644 = vmatpush3.bf16.msra.mxu1 %v1643_v50 }
 0x58b   :  { %1645 = vmatprep.subr.bf16.mxu1 %v1679_v0 }
 0x58e   :  { %1647 = vmatpush3.bf16.msra.mxu1 %v1646_v53 }
 0x58f   :  { %1648 = vmatprep.subr.bf16.mxu1 %v1679_v0 }
 0x592   :  { %1650 = vmatpush3.bf16.msra.mxu1 %v1649_v3 }
 0x593   :  { %1651 = vmatprep.subr.bf16.mxu1 %v1679_v0 }
 0x596   :  { %1653 = vmatpush3.bf16.msra.mxu1 %v1652_v9 }
 0x597   :  { %1654 = vmatprep.subr.bf16.mxu1 %v1679_v0 }
 0x59a   :  { %1656 = vmatpush3.bf16.msra.mxu1 %v1655_v12 }
 0x59b   :  { %1657 = vmatprep.subr.bf16.mxu1 %v1679_v0  ;;  %v952_v0 = vld [vmem:[%s2112_s8] ss:$0 sm:$0xff] }
 0x59e   :  { %1659 = vmatpush3.bf16.msra.mxu1 %v1658_v17 }
 0x654   :  { %v757_v58 = vpop.f32.mrb[6].mxu1 }
 0x655   :  { %v761_v59 = vadd.f32 %v757_v58, %v197_v57  ;;  %v1373_v60 = vpop.f32.mrb[7].mxu1 }
 0x657   :  { %1675 = vtanh.f32 %v761_v59 }
 0x661   :  { %v1676_v61 = vpop.eup %1675 }
 0x662   :  { %v764_v63 = vmul.f32 %v1676_v61, %v1908_v45 }
 0x664   :  { %v765_v1 = vadd.f32 %v764_v63, %v762_v62 }
 0x666   :  { %1407 = vmatmul.mubr.f32.vlgmr.msra.gmra.mrb[14].mxu0 %v765_v1  ;;  %v839_v27 = vmul.f32 %v765_v1, %v1903_v44 }
 0x739   :  { %v834_v21 = vpop.f32.mrb[14].mxu0 }
 0x73a   :  { %v838_v23 = vadd.f32 %v834_v21, %v198_v20  ;;  %v1408_v24 = vpop.f32.mrb[15].mxu0 }
 0x73c   :  { %1677 = vtanh.f32 %v838_v23 }
 0x746   :  { %v1678_v26 = vpop.eup %1677 }
 0x747   :  { %v841_v29 = vmul.f32 %v1678_v26, %v1908_v45 }
 0x749   :  { %v842_v30 = vadd.f32 %v841_v29, %v839_v27 }
 0x74b   :  { %1442 = vmatmul.mubr.f32.vlgmr.msra.gmra.mrb[8].mxu1 %v842_v30 }
 0x81e   :  { %v932_v31 = vpop.f32.mrb[8].mxu1 }
 0x81f   :  { %v933_v32 = vadd.f32 %v952_v0, %v932_v31  ;;  %v1443_v37 = vpop.f32.mrb[9].mxu1 }
 0x821   :  { %936 = vst [vmem:[%s2113_s9] sm:$0xff] %v933_v32 }

</bundles_post_ra>
